<compile_context>
chip_gen: v7x
topology: tpu7x:2x2x1
jax: 0.10.0
libtpu: 0.0.40
codegen_flags: <defaults>
</compile_context>

<pallas_src>
import jax
import jax.numpy as jnp
from jax.experimental import pallas as pl
from jax.experimental.pallas import tpu as pltpu

F_IO = 72  # 4 * 18 input/output features
# (out_features, in_features) for the six nn.Linear layers (torch layout).
DIMS = [(36, 72), (18, 36), (10, 18),   # encoder
        (18, 10), (36, 18), (72, 36)]   # decoder


def _make_kernel(matmul_dtype):
    """Kernel over transposed activations: x_ref / out_ref are [72, TB]."""

    def dense(w_ref, b_ref, h):
        # MXU matmul in `matmul_dtype` (bf16 by default), f32 accumulate,
        # f32 bias add.  h: [in, TB], w: [out, in], b: [out, 1].
        w = w_ref[...].astype(matmul_dtype)
        h = h.astype(matmul_dtype)
        return jnp.dot(w, h, preferred_element_type=jnp.float32) + b_ref[...]

    def ae_kernel(x_ref,
                  w1_ref, b1_ref, w2_ref, b2_ref, w3_ref, b3_ref,
                  w4_ref, b4_ref, w5_ref, b5_ref, w6_ref, b6_ref,
                  out_ref):
        xt = x_ref[...].astype(jnp.float32)                 # [72, TB]
        # ---- encoder ----
        h = jnp.maximum(dense(w1_ref, b1_ref, xt), 0.0)     # [36, TB]
        h = jnp.maximum(dense(w2_ref, b2_ref, h), 0.0)      # [18, TB]
        z = dense(w3_ref, b3_ref, h)                        # [10, TB]
        # ---- decoder ----
        d = jnp.maximum(dense(w4_ref, b4_ref, z), 0.0)      # [18, TB]
        d = jnp.maximum(dense(w5_ref, b5_ref, d), 0.0)      # [36, TB]
        y = jnp.tanh(dense(w6_ref, b6_ref, d))              # [72, TB]
        out_ref[...] = y.astype(out_ref.dtype)              # lane-dense store

    return ae_kernel


def autoencoder_forward(x, params, *, tile_b=512, matmul_dtype=jnp.bfloat16):
    """x: [B, 72] float32.  params: flat tuple (w1,b1,...,w6,b6) with
    w_i: [out, in] (torch layout) and b_i: [out, 1]."""
    B, F = x.shape
    assert F == F_IO
    n_tiles = pl.cdiv(B, tile_b)
    b_pad = n_tiles * tile_b

    # Pad ragged batch tail, then present the lane-dense transposed slab.
    x_pad = jnp.pad(x.astype(jnp.float32), ((0, b_pad - B), (0, 0)))
    x_t = x_pad.T                                            # [72, b_pad]

    kernel = _make_kernel(matmul_dtype)

    x_spec = pl.BlockSpec((F, tile_b), lambda i: (0, i))
    out_spec = pl.BlockSpec((F, tile_b), lambda i: (0, i))
    # Weights/biases: full-array blocks, constant index_map -> VMEM-resident.
    param_specs = [pl.BlockSpec(p.shape, lambda i: (0, 0)) for p in params]

    flops = 2 * sum(o * i for o, i in DIMS) * b_pad
    bytes_accessed = 2 * F * 4 * b_pad + sum(
        int(p.size) * p.dtype.itemsize for p in params)
    cost = pl.CostEstimate(flops=flops,
                           transcendentals=F * b_pad,       # final tanh
                           bytes_accessed=bytes_accessed)

    y_t = pl.pallas_call(
        kernel,
        out_shape=jax.ShapeDtypeStruct((F, b_pad), jnp.float32),
        grid=(n_tiles,),
        in_specs=[x_spec] + param_specs,
        out_specs=out_spec,
        compiler_params=pltpu.CompilerParams(
            dimension_semantics=("parallel",)),              # megacore on v7x
        cost_estimate=cost,
    )(x_t, *params)

    return y_t.T[:B]


def init_params(key):
    """Deterministic init matching nn.Linear sizes in AE.py (torch layout)."""
    params = []
    for (fan_out, fan_in) in DIMS:
        key, kw, kb = jax.random.split(key, 3)
        bound = 1.0 / float(fan_in) ** 0.5
        w = jax.random.uniform(kw, (fan_out, fan_in), jnp.float32, -bound, bound)
        b = jax.random.uniform(kb, (fan_out, 1), jnp.float32, -bound, bound)
        params += [w, b]
    return tuple(params)


def reference_forward(x, params, matmul_dtype=jnp.float32):
    """Pure-JAX reference in standard [B, features] layout."""
    def dense(w, b, h):
        return jnp.dot(h.astype(matmul_dtype), w.T.astype(matmul_dtype),
                       preferred_element_type=jnp.float32) + b.reshape(1, -1)

    w1, b1, w2, b2, w3, b3, w4, b4, w5, b5, w6, b6 = params
    h = jax.nn.relu(dense(w1, b1, x))
    h = jax.nn.relu(dense(w2, b2, h))
    z = dense(w3, b3, h)
    d = jax.nn.relu(dense(w4, b4, z))
    d = jax.nn.relu(dense(w5, b5, d))
    return jnp.tanh(dense(w6, b6, d))


if __name__ == "__main__":
    key = jax.random.PRNGKey(0)
    kx, kp = jax.random.split(key)
    B = 8
    x = jax.random.normal(kx, (B, F_IO), jnp.float32)
    params = init_params(kp)

    out = autoencoder_forward(x, params)          # bf16 MXU, f32 accumulate
    out = jax.block_until_ready(out)
    assert out.shape == (B, F_IO)

    # Exact-ish check vs a reference using the same bf16 matmul casting.
    ref_bf16 = reference_forward(x, params, matmul_dtype=jnp.bfloat16)
    assert jnp.allclose(out, ref_bf16, atol=1e-3, rtol=1e-3), \
        float(jnp.max(jnp.abs(out - ref_bf16)))

    # Sanity check vs the full-f32 reference (bf16 rounding only).
    ref_f32 = reference_forward(x, params, matmul_dtype=jnp.float32)
    assert jnp.allclose(out, ref_f32, atol=5e-2, rtol=5e-2)

    print("KERNEL_OK")
</pallas_src>

<mosaic_0001>
module attributes {stable_mosaic.version = 11 : i64} {
  func.func @ae_kernel(%arg0: i32, %arg1: memref<72x512xf32, #tpu.memory_space<vmem>>, %arg2: memref<36x72xf32, #tpu.memory_space<vmem>>, %arg3: memref<36x1xf32, #tpu.memory_space<vmem>>, %arg4: memref<18x36xf32, #tpu.memory_space<vmem>>, %arg5: memref<18x1xf32, #tpu.memory_space<vmem>>, %arg6: memref<10x18xf32, #tpu.memory_space<vmem>>, %arg7: memref<10x1xf32, #tpu.memory_space<vmem>>, %arg8: memref<18x10xf32, #tpu.memory_space<vmem>>, %arg9: memref<18x1xf32, #tpu.memory_space<vmem>>, %arg10: memref<36x18xf32, #tpu.memory_space<vmem>>, %arg11: memref<36x1xf32, #tpu.memory_space<vmem>>, %arg12: memref<72x36xf32, #tpu.memory_space<vmem>>, %arg13: memref<72x1xf32, #tpu.memory_space<vmem>>, %arg14: memref<72x512xf32, #tpu.memory_space<vmem>>) attributes {dimension_semantics = [#tpu.dimension_semantics<parallel>], iteration_bounds = array<i64: 1>, scalar_prefetch = 0 : i64, scratch_operands = 0 : i64, tpu.core_type = #tpu.core_type<tc>, window_params = [{transform_indices = @transform_0, window_bounds = array<i64: 72, 512>}, {pipeline_mode = #tpu.pipeline_mode<synchronous>, transform_indices = @transform_1, window_bounds = array<i64: 36, 72>}, {pipeline_mode = #tpu.pipeline_mode<synchronous>, transform_indices = @transform_2, window_bounds = array<i64: 36, 1>}, {pipeline_mode = #tpu.pipeline_mode<synchronous>, transform_indices = @transform_3, window_bounds = array<i64: 18, 36>}, {pipeline_mode = #tpu.pipeline_mode<synchronous>, transform_indices = @transform_4, window_bounds = array<i64: 18, 1>}, {pipeline_mode = #tpu.pipeline_mode<synchronous>, transform_indices = @transform_5, window_bounds = array<i64: 10, 18>}, {pipeline_mode = #tpu.pipeline_mode<synchronous>, transform_indices = @transform_6, window_bounds = array<i64: 10, 1>}, {pipeline_mode = #tpu.pipeline_mode<synchronous>, transform_indices = @transform_7, window_bounds = array<i64: 18, 10>}, {pipeline_mode = #tpu.pipeline_mode<synchronous>, transform_indices = @transform_8, window_bounds = array<i64: 18, 1>}, {pipeline_mode = #tpu.pipeline_mode<synchronous>, transform_indices = @transform_9, window_bounds = array<i64: 36, 18>}, {pipeline_mode = #tpu.pipeline_mode<synchronous>, transform_indices = @transform_10, window_bounds = array<i64: 36, 1>}, {pipeline_mode = #tpu.pipeline_mode<synchronous>, transform_indices = @transform_11, window_bounds = array<i64: 72, 36>}, {pipeline_mode = #tpu.pipeline_mode<synchronous>, transform_indices = @transform_12, window_bounds = array<i64: 72, 1>}, {transform_indices = @transform_13, window_bounds = array<i64: 72, 512>}]} {
    %c0 = arith.constant 0 : index
    %c0_0 = arith.constant 0 : index
    %0 = vector.load %arg1[%c0, %c0_0] : memref<72x512xf32, #tpu.memory_space<vmem>>, vector<72x512xf32>
    %c0_1 = arith.constant 0 : index
    %c0_2 = arith.constant 0 : index
    %1 = vector.load %arg2[%c0_1, %c0_2] : memref<36x72xf32, #tpu.memory_space<vmem>>, vector<36x72xf32>
    %2 = arith.truncf %1 : vector<36x72xf32> to vector<36x72xbf16>
    %3 = arith.truncf %0 : vector<72x512xf32> to vector<72x512xbf16>
    %cst = arith.constant dense<0.000000e+00> : vector<36x512xf32>
    %4 = tpu.matmul %2, %3, %cst {dimension_numbers = #tpu.dot_dimension_numbers<[1], [0], [0], [1], [0, 0, 1, 1], [], []>} : vector<36x72xbf16>, vector<72x512xbf16>, vector<36x512xf32> -> vector<36x512xf32>
    %c0_3 = arith.constant 0 : index
    %c0_4 = arith.constant 0 : index
    %5 = vector.load %arg3[%c0_3, %c0_4] : memref<36x1xf32, #tpu.memory_space<vmem>>, vector<36x1xf32>
    %6 = vector.broadcast %5 : vector<36x1xf32> to vector<36x512xf32>
    %7 = arith.addf %4, %6 : vector<36x512xf32>
    %cst_5 = arith.constant 0.000000e+00 : f32
    %8 = vector.broadcast %cst_5 : f32 to vector<36x512xf32>
    %9 = arith.maximumf %7, %8 : vector<36x512xf32>
    %c0_6 = arith.constant 0 : index
    %c0_7 = arith.constant 0 : index
    %10 = vector.load %arg4[%c0_6, %c0_7] : memref<18x36xf32, #tpu.memory_space<vmem>>, vector<18x36xf32>
    %11 = arith.truncf %10 : vector<18x36xf32> to vector<18x36xbf16>
    %12 = arith.truncf %9 : vector<36x512xf32> to vector<36x512xbf16>
    %cst_8 = arith.constant dense<0.000000e+00> : vector<18x512xf32>
    %13 = tpu.matmul %11, %12, %cst_8 {dimension_numbers = #tpu.dot_dimension_numbers<[1], [0], [0], [1], [0, 0, 1, 1], [], []>} : vector<18x36xbf16>, vector<36x512xbf16>, vector<18x512xf32> -> vector<18x512xf32>
    %c0_9 = arith.constant 0 : index
    %c0_10 = arith.constant 0 : index
    %14 = vector.load %arg5[%c0_9, %c0_10] : memref<18x1xf32, #tpu.memory_space<vmem>>, vector<18x1xf32>
    %15 = vector.broadcast %14 : vector<18x1xf32> to vector<18x512xf32>
    %16 = arith.addf %13, %15 : vector<18x512xf32>
    %cst_11 = arith.constant 0.000000e+00 : f32
    %17 = vector.broadcast %cst_11 : f32 to vector<18x512xf32>
    %18 = arith.maximumf %16, %17 : vector<18x512xf32>
    %c0_12 = arith.constant 0 : index
    %c0_13 = arith.constant 0 : index
    %19 = vector.load %arg6[%c0_12, %c0_13] : memref<10x18xf32, #tpu.memory_space<vmem>>, vector<10x18xf32>
    %20 = arith.truncf %19 : vector<10x18xf32> to vector<10x18xbf16>
    %21 = arith.truncf %18 : vector<18x512xf32> to vector<18x512xbf16>
    %cst_14 = arith.constant dense<0.000000e+00> : vector<10x512xf32>
    %22 = tpu.matmul %20, %21, %cst_14 {dimension_numbers = #tpu.dot_dimension_numbers<[1], [0], [0], [1], [0, 0, 1, 1], [], []>} : vector<10x18xbf16>, vector<18x512xbf16>, vector<10x512xf32> -> vector<10x512xf32>
    %c0_15 = arith.constant 0 : index
    %c0_16 = arith.constant 0 : index
    %23 = vector.load %arg7[%c0_15, %c0_16] : memref<10x1xf32, #tpu.memory_space<vmem>>, vector<10x1xf32>
    %24 = vector.broadcast %23 : vector<10x1xf32> to vector<10x512xf32>
    %25 = arith.addf %22, %24 : vector<10x512xf32>
    %c0_17 = arith.constant 0 : index
    %c0_18 = arith.constant 0 : index
    %26 = vector.load %arg8[%c0_17, %c0_18] : memref<18x10xf32, #tpu.memory_space<vmem>>, vector<18x10xf32>
    %27 = arith.truncf %26 : vector<18x10xf32> to vector<18x10xbf16>
    %28 = arith.truncf %25 : vector<10x512xf32> to vector<10x512xbf16>
    %cst_19 = arith.constant dense<0.000000e+00> : vector<18x512xf32>
    %29 = tpu.matmul %27, %28, %cst_19 {dimension_numbers = #tpu.dot_dimension_numbers<[1], [0], [0], [1], [0, 0, 1, 1], [], []>} : vector<18x10xbf16>, vector<10x512xbf16>, vector<18x512xf32> -> vector<18x512xf32>
    %c0_20 = arith.constant 0 : index
    %c0_21 = arith.constant 0 : index
    %30 = vector.load %arg9[%c0_20, %c0_21] : memref<18x1xf32, #tpu.memory_space<vmem>>, vector<18x1xf32>
    %31 = vector.broadcast %30 : vector<18x1xf32> to vector<18x512xf32>
    %32 = arith.addf %29, %31 : vector<18x512xf32>
    %cst_22 = arith.constant 0.000000e+00 : f32
    %33 = vector.broadcast %cst_22 : f32 to vector<18x512xf32>
    %34 = arith.maximumf %32, %33 : vector<18x512xf32>
    %c0_23 = arith.constant 0 : index
    %c0_24 = arith.constant 0 : index
    %35 = vector.load %arg10[%c0_23, %c0_24] : memref<36x18xf32, #tpu.memory_space<vmem>>, vector<36x18xf32>
    %36 = arith.truncf %35 : vector<36x18xf32> to vector<36x18xbf16>
    %37 = arith.truncf %34 : vector<18x512xf32> to vector<18x512xbf16>
    %cst_25 = arith.constant dense<0.000000e+00> : vector<36x512xf32>
    %38 = tpu.matmul %36, %37, %cst_25 {dimension_numbers = #tpu.dot_dimension_numbers<[1], [0], [0], [1], [0, 0, 1, 1], [], []>} : vector<36x18xbf16>, vector<18x512xbf16>, vector<36x512xf32> -> vector<36x512xf32>
    %c0_26 = arith.constant 0 : index
    %c0_27 = arith.constant 0 : index
    %39 = vector.load %arg11[%c0_26, %c0_27] : memref<36x1xf32, #tpu.memory_space<vmem>>, vector<36x1xf32>
    %40 = vector.broadcast %39 : vector<36x1xf32> to vector<36x512xf32>
    %41 = arith.addf %38, %40 : vector<36x512xf32>
    %cst_28 = arith.constant 0.000000e+00 : f32
    %42 = vector.broadcast %cst_28 : f32 to vector<36x512xf32>
    %43 = arith.maximumf %41, %42 : vector<36x512xf32>
    %c0_29 = arith.constant 0 : index
    %c0_30 = arith.constant 0 : index
    %44 = vector.load %arg12[%c0_29, %c0_30] : memref<72x36xf32, #tpu.memory_space<vmem>>, vector<72x36xf32>
    %45 = arith.truncf %44 : vector<72x36xf32> to vector<72x36xbf16>
    %46 = arith.truncf %43 : vector<36x512xf32> to vector<36x512xbf16>
    %cst_31 = arith.constant dense<0.000000e+00> : vector<72x512xf32>
    %47 = tpu.matmul %45, %46, %cst_31 {dimension_numbers = #tpu.dot_dimension_numbers<[1], [0], [0], [1], [0, 0, 1, 1], [], []>} : vector<72x36xbf16>, vector<36x512xbf16>, vector<72x512xf32> -> vector<72x512xf32>
    %c0_32 = arith.constant 0 : index
    %c0_33 = arith.constant 0 : index
    %48 = vector.load %arg13[%c0_32, %c0_33] : memref<72x1xf32, #tpu.memory_space<vmem>>, vector<72x1xf32>
    %49 = vector.broadcast %48 : vector<72x1xf32> to vector<72x512xf32>
    %50 = arith.addf %47, %49 : vector<72x512xf32>
    %51 = math.tanh %50 : vector<72x512xf32>
    %c0_34 = arith.constant 0 : index
    %c0_35 = arith.constant 0 : index
    %52 = vector.load %arg14[%c0_34, %c0_35] : memref<72x512xf32, #tpu.memory_space<vmem>>, vector<72x512xf32>
    tpu.vector_store %arg14[%c0_34, %c0_35], %51 {strides = array<i32>} : memref<72x512xf32, #tpu.memory_space<vmem>>, vector<72x512xf32>,
    return
  }
  func.func @transform_0(%arg0: i32) -> (i32, i32) {
    %c0_i32 = arith.constant 0 : i32
    %c0_i32_0 = arith.constant 0 : i32
    return %c0_i32, %arg0 : i32, i32
  }
  func.func @transform_1(%arg0: i32) -> (i32, i32) {
    %c0_i32 = arith.constant 0 : i32
    %c0_i32_0 = arith.constant 0 : i32
    %c0_i32_1 = arith.constant 0 : i32
    return %c0_i32, %c0_i32_0 : i32, i32
  }
  func.func @transform_2(%arg0: i32) -> (i32, i32) {
    %c0_i32 = arith.constant 0 : i32
    %c0_i32_0 = arith.constant 0 : i32
    %c0_i32_1 = arith.constant 0 : i32
    return %c0_i32, %c0_i32_0 : i32, i32
  }
  func.func @transform_3(%arg0: i32) -> (i32, i32) {
    %c0_i32 = arith.constant 0 : i32
    %c0_i32_0 = arith.constant 0 : i32
    %c0_i32_1 = arith.constant 0 : i32
    return %c0_i32, %c0_i32_0 : i32, i32
  }
  func.func @transform_4(%arg0: i32) -> (i32, i32) {
    %c0_i32 = arith.constant 0 : i32
    %c0_i32_0 = arith.constant 0 : i32
    %c0_i32_1 = arith.constant 0 : i32
    return %c0_i32, %c0_i32_0 : i32, i32
  }
  func.func @transform_5(%arg0: i32) -> (i32, i32) {
    %c0_i32 = arith.constant 0 : i32
    %c0_i32_0 = arith.constant 0 : i32
    %c0_i32_1 = arith.constant 0 : i32
    return %c0_i32, %c0_i32_0 : i32, i32
  }
  func.func @transform_6(%arg0: i32) -> (i32, i32) {
    %c0_i32 = arith.constant 0 : i32
    %c0_i32_0 = arith.constant 0 : i32
    %c0_i32_1 = arith.constant 0 : i32
    return %c0_i32, %c0_i32_0 : i32, i32
  }
  func.func @transform_7(%arg0: i32) -> (i32, i32) {
    %c0_i32 = arith.constant 0 : i32
    %c0_i32_0 = arith.constant 0 : i32
    %c0_i32_1 = arith.constant 0 : i32
    return %c0_i32, %c0_i32_0 : i32, i32
  }
  func.func @transform_8(%arg0: i32) -> (i32, i32) {
    %c0_i32 = arith.constant 0 : i32
    %c0_i32_0 = arith.constant 0 : i32
    %c0_i32_1 = arith.constant 0 : i32
    return %c0_i32, %c0_i32_0 : i32, i32
  }
  func.func @transform_9(%arg0: i32) -> (i32, i32) {
    %c0_i32 = arith.constant 0 : i32
    %c0_i32_0 = arith.constant 0 : i32
    %c0_i32_1 = arith.constant 0 : i32
    return %c0_i32, %c0_i32_0 : i32, i32
  }
  func.func @transform_10(%arg0: i32) -> (i32, i32) {
    %c0_i32 = arith.constant 0 : i32
    %c0_i32_0 = arith.constant 0 : i32
    %c0_i32_1 = arith.constant 0 : i32
    return %c0_i32, %c0_i32_0 : i32, i32
  }
  func.func @transform_11(%arg0: i32) -> (i32, i32) {
    %c0_i32 = arith.constant 0 : i32
    %c0_i32_0 = arith.constant 0 : i32
    %c0_i32_1 = arith.constant 0 : i32
    return %c0_i32, %c0_i32_0 : i32, i32
  }
  func.func @transform_12(%arg0: i32) -> (i32, i32) {
    %c0_i32 = arith.constant 0 : i32
    %c0_i32_0 = arith.constant 0 : i32
    %c0_i32_1 = arith.constant 0 : i32
    return %c0_i32, %c0_i32_0 : i32, i32
  }
  func.func @transform_13(%arg0: i32) -> (i32, i32) {
    %c0_i32 = arith.constant 0 : i32
    %c0_i32_0 = arith.constant 0 : i32
    return %c0_i32, %arg0 : i32, i32
  }
}

</mosaic_0001>

<bundles_post_ra>
// kernel: tpu_custom_call.1
= control target key start
LH: loop header
LB: loop body
LE: loop exit
PB: predicated region body
PF: predicated region fallthrough
CT: control target
= control target key end

     0   :  { %v1473_v7 = vmov 0   ;;  %vm150_vm0 = vcmask 1043456   ;;  %vm140_vm1 = vcmask 588800   ;;  %s1911_s0 = inlined_call_operand.vmem [shape: f32[72,512], index: 0, kind: input, shape index: {}]   ;;  %s1912_s1 = inlined_call_operand.vmem [shape: f32[36,72], index: 1, kind: input, shape index: {}]   ;;  %s1913_s2 = inlined_call_operand.vmem [shape: f32[36,1], index: 2, kind: input, shape index: {}]   ;;  %s1914_s3 = inlined_call_operand.vmem [shape: f32[18,36], index: 3, kind: input, shape index: {}]   ;;  %s1915_s4 = inlined_call_operand.vmem [shape: f32[18,1], index: 4, kind: input, shape index: {}]   ;;  %s1916_s5 = inlined_call_operand.vmem [shape: f32[10,18], index: 5, kind: input, shape index: {}]   ;;  %s1917_s6 = inlined_call_operand.vmem [shape: f32[10,1], index: 6, kind: input, shape index: {}]   ;;  %s1918_s7 = inlined_call_operand.vmem [shape: f32[18,10], index: 7, kind: input, shape index: {}]   ;;  %s1919_s8 = inlined_call_operand.vmem [shape: f32[18,1], index: 8, kind: input, shape index: {}]   ;;  %s1920_s9 = inlined_call_operand.vmem [shape: f32[36,18], index: 9, kind: input, shape index: {}]   ;;  %s1921_s10 = inlined_call_operand.vmem [shape: f32[36,1], index: 10, kind: input, shape index: {}]   ;;  %s1922_s11 = inlined_call_operand.vmem [shape: f32[72,36], index: 11, kind: input, shape index: {}]   ;;  %s1923_s12 = inlined_call_operand.vmem [shape: f32[72,1], index: 12, kind: input, shape index: {}]   ;;  %s1924_s13 = inlined_call_operand.hbm [shape: f32[72,512], index: 13, kind: output, shape index: {}]  }
   0x1   :  { %v47_v0 = vld [vmem:[%s1911_s0 + $0x8] sm:$0xff]  ;;  %v49_v2 = vld [vmem:[%s1911_s0 + $0x18] sm:$0xff]  ;;  %v46_v5 = vld [vmem:[%s1911_s0] sm:$0xff]  ;;  %195 = vmatprep.mubr.bf16.mxu0 %v1473_v7  ;;  %256 = vmatprep.mubr.bf16.mxu1 %v1473_v7 }
   0x2   :  { %v51_v1 = vld [vmem:[%s1911_s0 + $0x28] sm:$0xff]  ;;  %v53_v4 = vld [vmem:[%s1911_s0 + $0x38] sm:$0xff]  ;;  %v50_v6 = vld [vmem:[%s1911_s0 + $0x20] sm:$0xff]  ;;  %1375 = vset.pattern.permute.xlu0 %v1473_v7  ;;  %1376 = vset.pattern.permute.xlu1 %v1473_v7 }
   0x3   :  { %v91_v3 = vpack.c.bf16 %v51_v1, %v47_v0  ;;  %v93_v8 = vpack.c.bf16 %v53_v4, %v49_v2  ;;  %v90_v9 = vpack.c.bf16 %v50_v6, %v46_v5  ;;  %v48_v10 = vld [vmem:[%s1911_s0 + $0x10] sm:$0xff]  ;;  %v55_v12 = vld [vmem:[%s1911_s0 + $0x48] sm:$0xff]  ;;  %v57_v15 = vld [vmem:[%s1911_s0 + $0x58] sm:$0xff] }
   0x4   :  { %v52_v11 = vld [vmem:[%s1911_s0 + $0x30] sm:$0xff]  ;;  %v59_v14 = vld [vmem:[%s1911_s0 + $0x68] sm:$0xff]  ;;  %v61_v16 = vld [vmem:[%s1911_s0 + $0x78] sm:$0xff] }
   0x5   :  { %163 = vmatprep.subr.bf16.mxu0 %v91_v3  ;;  %v92_v13 = vpack.c.bf16 %v52_v11, %v48_v10  ;;  %224 = vmatprep.subr.bf16.mxu1 %v93_v8  ;;  %v95_v17 = vpack.c.bf16 %v59_v14, %v55_v12  ;;  %v97_v18 = vpack.c.bf16 %v61_v16, %v57_v15  ;;  %v54_v19 = vld [vmem:[%s1911_s0 + $0x40] sm:$0xff]  ;;  %v56_v21 = vld [vmem:[%s1911_s0 + $0x50] sm:$0xff]  ;;  %v63_v24 = vld [vmem:[%s1911_s0 + $0x88] sm:$0xff] }
   0x6   :  { %164 = vmatpush1.bf16.msra.mxu0 %v90_v9  ;;  %v58_v20 = vld [vmem:[%s1911_s0 + $0x60] sm:$0xff]  ;;  %v60_v23 = vld [vmem:[%s1911_s0 + $0x70] sm:$0xff]  ;;  %v67_v25 = vld [vmem:[%s1911_s0 + $0xa8] sm:$0xff] }
   0x7   :  { %225 = vmatpush1.bf16.msra.mxu1 %v92_v13  ;;  %v94_v22 = vpack.c.bf16 %v58_v20, %v54_v19  ;;  %165 = vmatprep.subr.bf16.mxu0 %v95_v17  ;;  %v96_v26 = vpack.c.bf16 %v60_v23, %v56_v21  ;;  %v99_v27 = vpack.c.bf16 %v67_v25, %v63_v24  ;;  %v65_v28 = vld [vmem:[%s1911_s0 + $0x98] sm:$0xff]  ;;  %v62_v30 = vld [vmem:[%s1911_s0 + $0x80] sm:$0xff]  ;;  %v64_v33 = vld [vmem:[%s1911_s0 + $0x90] sm:$0xff] }
   0x8   :  { %226 = vmatprep.subr.bf16.mxu1 %v97_v18  ;;  %v69_v29 = vld [vmem:[%s1911_s0 + $0xb8] sm:$0xff]  ;;  %v66_v32 = vld [vmem:[%s1911_s0 + $0xa0] sm:$0xff]  ;;  %v68_v34 = vld [vmem:[%s1911_s0 + $0xb0] sm:$0xff] }
   0x9   :  { %v101_v31 = vpack.c.bf16 %v69_v29, %v65_v28  ;;  %v98_v35 = vpack.c.bf16 %v66_v32, %v62_v30  ;;  %v71_v36 = vld [vmem:[%s1911_s0 + $0xc8] sm:$0xff]  ;;  %v73_v38 = vld [vmem:[%s1911_s0 + $0xd8] sm:$0xff]  ;;  %v100_v39 = vpack.c.bf16 %v68_v34, %v64_v33  ;;  %v70_v42 = vld [vmem:[%s1911_s0 + $0xc0] sm:$0xff] }
   0xa   :  { %166 = vmatpush1.bf16.msra.mxu0 %v94_v22  ;;  %v75_v37 = vld [vmem:[%s1911_s0 + $0xe8] sm:$0xff]  ;;  %v77_v41 = vld [vmem:[%s1911_s0 + $0xf8] sm:$0xff]  ;;  %v74_v43 = vld [vmem:[%s1911_s0 + $0xe0] sm:$0xff] }
   0xb   :  { %227 = vmatpush1.bf16.msra.mxu1 %v96_v26  ;;  %167 = vmatprep.subr.bf16.mxu0 %v99_v27  ;;  %v103_v40 = vpack.c.bf16 %v75_v37, %v71_v36  ;;  %v105_v44 = vpack.c.bf16 %v77_v41, %v73_v38  ;;  %v72_v45 = vld [vmem:[%s1911_s0 + $0xd0] sm:$0xff]  ;;  %v79_v47 = vld [vmem:[%s1911_s0 + $0x108] sm:$0xff]  ;;  %v81_v48 = vld [vmem:[%s1911_s0 + $0x118] sm:$0xff]  ;;  %v102_v51 = vpack.c.bf16 %v74_v43, %v70_v42 }
   0xc   :  { %228 = vmatprep.subr.bf16.mxu1 %v101_v31  ;;  %v76_v46 = vld [vmem:[%s1911_s0 + $0xf0] sm:$0xff]  ;;  %v78_v49 = vld [vmem:[%s1911_s0 + $0x100] sm:$0xff]  ;;  %v107_v53 = vpack.c.bf16 %v79_v47, %v79_v47  ;;  %v109_v56 = vpack.c.bf16 %v81_v48, %v81_v48  ;;  %v111_v59 = vld [vmem:[%s1913_s2 + $0x8] sm:$0xff] }
   0xd   :  { %v80_v50 = vld [vmem:[%s1911_s0 + $0x110] sm:$0xff]  ;;  %v104_v52 = vpack.c.bf16 %v76_v46, %v72_v45  ;;  %v106_v54 = vpack.c.bf16 %v78_v49, %v78_v49  ;;  %v110_v55 = vld [vmem:[%s1913_s2] sm:$0xff]  ;;  %v83_v61 = vld [vmem:[%s1912_s1 + $0x8] sm:$0xff] }
   0xe   :  { %168 = vmatpush1.bf16.msra.mxu0 %v98_v35  ;;  %v108_v57 = vpack.c.bf16 %v80_v50, %v80_v50  ;;  %117 = vperm.xlu0 %1375, %v110_v55   ;;  %v112_v58 = vld [vmem:[%s1913_s2 + $0x10] sm:$0xff]  ;;  %v82_v60 = vld [vmem:[%s1912_s1] sm:$0xff]  ;;  %v113_v62 = vld [vmem:[%s1913_s2 + $0x18] sm:$0xff] }
   0xf   :  { %229 = vmatpush1.bf16.msra.mxu1 %v100_v39  ;;  %169 = vmatprep.subr.bf16.mxu0 %v103_v40  ;;  %v152_v63 = vsel %vm150_vm0, %v106_v54, 0  ;;  %v87_v1 = vpack.c.bf16 %v83_v61, %v82_v60  ;;  %v114_v2 = vld [vmem:[%s1913_s2 + $0x20] sm:$0xf] }
  0x10   :  { %230 = vmatprep.subr.bf16.mxu1 %v105_v44  ;;  %127 = vperm.xlu1 %1376, %v112_v58   ;;  %v158_v0 = vsel %vm150_vm0, %v108_v57, 0  ;;  %v322_v3 = vld [vmem:[%s1915_s4] sm:$0xff] }
  0x12   :  { %170 = vmatpush1.bf16.msra.mxu0 %v102_v51  ;;  %122 = vperm.xlu0 %1375, %v111_v59  }
  0x13   :  { %231 = vmatpush1.bf16.msra.mxu1 %v104_v52  ;;  %1327 = vmatprep.subr.msk.bf16.mxu0 %vm150_vm0, %v107_v53 }
  0x14   :  { %1331 = vmatprep.subr.msk.bf16.mxu1 %vm150_vm0, %v109_v56  ;;  %132 = vperm.xlu1 %1376, %v113_v62  }
  0x16   :  { %172 = vmatpush1.bf16.msra.mxu0 %v152_v63  ;;  %137 = vperm.xlu0 %1375, %v114_v2  }
  0x17   :  { %233 = vmatpush1.bf16.msra.mxu1 %v158_v0 }
  0x18   :  { %18 = vsyncpa [#allocation3], 0  ;;  %v323_v4 = vld [vmem:[%s1915_s4 + $0x8] sm:$0xff]  ;;  %327 = vperm.xlu1 %1376, %v322_v3   ;;  %v84_v5 = vld [vmem:[%s1912_s1 + $0x10] sm:$0xff]  ;;  %vm347_vm2 = vcmask 1041408   ;;  %vm340_vm3 = vcmask 293888  }
  0x19   :  { %1328 = vmatmul.mubr.msk.bf16.vlgmr.msra.gmra.mrb[0].mxu0 %vm140_vm1, %v87_v1  ;;  %v85_v6 = vld [vmem:[%s1912_s1 + $0x18] sm:$0xff]  ;;  %v324_v8 = vld [vmem:[%s1915_s4 + $0x10] sm:$0x3]  ;;  %v485_v10 = vld [vmem:[%s1917_s6] sm:$0xff]  ;;  %vm501_vm4 = vcmask 1040384   ;;  %vm497_vm5 = vcmask 146432  }
  0x1a   :  { %1332 = vmatmul.mubr.msk.bf16.vlgmr.msra.gmra.mrb[0].mxu1 %vm140_vm1, %v87_v1  ;;  %205 = vmatprep.mubr.bf16.mxu0 %v1473_v7  ;;  %v88_v9 = vpack.c.bf16 %v85_v6, %v84_v5  ;;  %v486_v11 = vld [vmem:[%s1917_s6 + $0x8] sm:$0x3]  ;;  %v609_v12 = vld [vmem:[%s1919_s8] sm:$0xff]  ;;  %v611_v16 = vld [vmem:[%s1919_s8 + $0x10] sm:$0x3]  ;;  %vm634_vm6 = vcmask 1044480  }
  0x1b   :  { %266 = vmatprep.mubr.bf16.mxu1 %v1473_v7  ;;  %332 = vperm.xlu0 %1375, %v323_v4   ;;  %v86_v13 = vld [vmem:[%s1912_s1 + $0x20] sm:$0xf]  ;;  %v610_v14 = vld [vmem:[%s1919_s8 + $0x8] sm:$0xff]  ;;  %v779_v19 = vld [vmem:[%s1921_s10 + $0x10] sm:$0xff]  ;;  %vm627_vm7 = vcmask 80896  }
  0x1c   :  { %337 = vperm.xlu1 %1376, %v324_v8   ;;  %v89_v15 = vpack.c.bf16 %v86_v13, %v86_v13  ;;  %v777_v17 = vld [vmem:[%s1921_s10] sm:$0xff]  ;;  %v778_v18 = vld [vmem:[%s1921_s10 + $0x8] sm:$0xff]  ;;  %v780_v20 = vld [vmem:[%s1921_s10 + $0x18] sm:$0xff] }
  0x1d   :  { %v781_v21 = vld [vmem:[%s1921_s10 + $0x20] sm:$0xf]  ;;  %v997_v23 = vld [vmem:[%s1923_s12 + $0x8] sm:$0xff]  ;;  %v998_v24 = vld [vmem:[%s1923_s12 + $0x10] sm:$0xff] }
  0x1e   :  { %v996_v22 = vld [vmem:[%s1923_s12] sm:$0xff]  ;;  %v999_v25 = vld [vmem:[%s1923_s12 + $0x18] sm:$0xff]  ;;  %v1001_v27 = vld [vmem:[%s1923_s12 + $0x28] sm:$0xff] }
  0x1f   :  { %489 = vperm.xlu0 %1375, %v485_v10   ;;  %v1000_v26 = vld [vmem:[%s1923_s12 + $0x20] sm:$0xff]  ;;  %v1002_v28 = vld [vmem:[%s1923_s12 + $0x30] sm:$0xff]  ;;  %v1003_v29 = vld [vmem:[%s1923_s12 + $0x38] sm:$0xff] }
  0x20   :  { %494 = vperm.xlu1 %1376, %v486_v11   ;;  %v1004_v30 = vld [vmem:[%s1923_s12 + $0x40] sm:$0xff] }
  0x21   :  { %1329 = vmatmul.mubr.msk.bf16.gmra.mrb[4].mxu0 %vm140_vm1, %v88_v9 }
  0x22   :  { %1333 = vmatmul.mubr.msk.bf16.gmra.mrb[4].mxu1 %vm140_vm1, %v88_v9  ;;  %215 = vmatprep.mubr.bf16.mxu0 %v1473_v7 }
  0x23   :  { %276 = vmatprep.mubr.bf16.mxu1 %v1473_v7  ;;  %614 = vperm.xlu0 %1375, %v609_v12  }
  0x24   :  { %619 = vperm.xlu1 %1376, %v610_v14  }
  0x27   :  { %624 = vperm.xlu0 %1375, %v611_v16  }
  0x28   :  { %784 = vperm.xlu1 %1376, %v777_v17  }
  0x29   :  { %1330 = vmatmul.mubr.msk.bf16.gmra.mrb[8].mxu0 %vm140_vm1, %v89_v15 }
  0x2a   :  { %1334 = vmatmul.mubr.msk.bf16.gmra.mrb[8].mxu1 %vm140_vm1, %v89_v15  ;;  %392 = vmatprep.mubr.bf16.mxu0 %v1473_v7 }
  0x2b   :  { %443 = vmatprep.mubr.bf16.mxu1 %v1473_v7  ;;  %789 = vperm.xlu0 %1375, %v778_v18  }
  0x2c   :  { %794 = vperm.xlu1 %1376, %v779_v19  }
  0x2f   :  { %799 = vperm.xlu0 %1375, %v780_v20  }
  0x30   :  { %804 = vperm.xlu1 %1376, %v781_v21  }
  0x33   :  { %1007 = vperm.xlu0 %1375, %v996_v22  }
  0x34   :  { %1012 = vperm.xlu1 %1376, %v997_v23  }
  0x37   :  { %1017 = vperm.xlu0 %1375, %v998_v24  }
  0x38   :  { %1022 = vperm.xlu1 %1376, %v999_v25  }
  0x3b   :  { %1027 = vperm.xlu0 %1375, %v1000_v26  }
  0x3c   :  { %1032 = vperm.xlu1 %1376, %v1001_v27  }
  0x3f   :  { %1037 = vperm.xlu0 %1375, %v1002_v28  }
  0x40   :  { %1042 = vperm.xlu1 %1376, %v1003_v29  }
  0x43   :  { %1047 = vperm.xlu0 %1375, %v1004_v30  }
  0x8d   :  { %v118_v31 = vpop.permute.xlu0 %117 }
  0x8f   :  { %v128_v32 = vpop.permute.xlu1 %127 }
  0x91   :  { %v123_v33 = vpop.permute.xlu0 %122 }
  0x93   :  { %v133_v59 = vpop.permute.xlu1 %132 }
  0x95   :  { %v138_v25 = vpop.permute.xlu0 %137 }
  0xec   :  { %v197_v34 = vpop.f32.mrb[0].mxu0 }
  0xed   :  { %v198_v35 = vadd.f32 %v197_v34, %v118_v31  ;;  %v258_v36 = vpop.f32.mrb[0].mxu1  ;;  %v199_v37 = vpop.f32.mrb[1].mxu0 }
  0xee   :  { %v259_v38 = vadd.f32 %v258_v36, %v118_v31  ;;  %v200_v39 = vadd.f32 %v199_v37, %v118_v31  ;;  %v260_v40 = vpop.f32.mrb[1].mxu1  ;;  %v201_v41 = vpop.f32.mrb[2].mxu0 }
  0xef   :  { %v261_v42 = vadd.f32 %v260_v40, %v118_v31  ;;  %v202_v43 = vadd.f32 %v201_v41, %v123_v33  ;;  %v262_v44 = vpop.f32.mrb[2].mxu1  ;;  %v203_v45 = vpop.f32.mrb[3].mxu0  ;;  %v285_v49 = vmax.f32 %v198_v35, 0.0 }
  0xf0   :  { %v263_v46 = vadd.f32 %v262_v44, %v123_v33  ;;  %v204_v47 = vadd.f32 %v203_v45, %v123_v33  ;;  %v264_v48 = vpop.f32.mrb[3].mxu1  ;;  %v287_v52 = vmax.f32 %v259_v38, 0.0  ;;  %v286_v53 = vmax.f32 %v200_v39, 0.0 }
  0xf1   :  { %v289_v50 = vmax.f32 %v202_v43, 0.0  ;;  %v265_v51 = vadd.f32 %v264_v48, %v123_v33  ;;  %v288_v56 = vmax.f32 %v261_v42, 0.0 }
  0xf2   :  { %v291_v54 = vmax.f32 %v263_v46, 0.0  ;;  %v290_v55 = vmax.f32 %v204_v47, 0.0  ;;  %v305_v46 = vld [vmem:[%s1914_s3] sm:$0xff]  ;;  %v306_v47 = vld [vmem:[%s1914_s3 + $0x8] sm:$0xff] }
  0xf3   :  { %v310_v57 = vpack.c.bf16 %v289_v50, %v285_v49  ;;  %v292_v58 = vmax.f32 %v265_v51, 0.0 }
  0xf4   :  { %v312_v60 = vpack.c.bf16 %v291_v54, %v287_v52  ;;  %v311_v61 = vpack.c.bf16 %v290_v55, %v286_v53  ;;  %v207_v62 = vpop.f32.mrb[4].mxu0  ;;  %v308_v53 = vpack.c.bf16 %v306_v47, %v305_v46  ;;  %v307_v54 = vld [vmem:[%s1914_s3 + $0x10] sm:$0x3] }
  0xf5   :  { %v313_v63 = vpack.c.bf16 %v292_v58, %v288_v56  ;;  %v208_v0 = vadd.f32 %v207_v62, %v128_v32  ;;  %v268_v1 = vpop.f32.mrb[4].mxu1  ;;  %v209_v2 = vpop.f32.mrb[5].mxu0  ;;  %v309_v55 = vpack.c.bf16 %v307_v54, %v307_v54 }
  0xf6   :  { %v269_v3 = vadd.f32 %v268_v1, %v128_v32  ;;  %v210_v4 = vadd.f32 %v209_v2, %v128_v32  ;;  %v270_v5 = vpop.f32.mrb[5].mxu1  ;;  %v211_v6 = vpop.f32.mrb[6].mxu0  ;;  %360 = vmatprep.subr.bf16.mxu0 %v311_v61 }
  0xf7   :  { %v271_v8 = vadd.f32 %v270_v5, %v128_v32  ;;  %v212_v9 = vadd.f32 %v211_v6, %v133_v59  ;;  %v272_v10 = vpop.f32.mrb[6].mxu1  ;;  %411 = vmatprep.subr.bf16.mxu1 %v313_v63  ;;  %v213_v11 = vpop.f32.mrb[7].mxu0  ;;  %361 = vmatpush1.bf16.msra.mxu0 %v310_v57  ;;  %v293_v15 = vmax.f32 %v208_v0, 0.0 }
  0xf8   :  { %v273_v12 = vadd.f32 %v272_v10, %v133_v59  ;;  %v214_v13 = vadd.f32 %v213_v11, %v133_v59  ;;  %v274_v14 = vpop.f32.mrb[7].mxu1  ;;  %412 = vmatpush1.bf16.msra.mxu1 %v312_v60  ;;  %v295_v18 = vmax.f32 %v269_v3, 0.0  ;;  %v294_v19 = vmax.f32 %v210_v4, 0.0  ;;  %v328_v56 = vpop.permute.xlu1 %327 }
  0xf9   :  { %v297_v16 = vmax.f32 %v212_v9, 0.0  ;;  %v275_v17 = vadd.f32 %v274_v14, %v133_v59  ;;  %v296_v22 = vmax.f32 %v271_v8, 0.0  ;;  %v333_v57 = vpop.permute.xlu0 %332 }
  0xfa   :  { %v299_v20 = vmax.f32 %v273_v12, 0.0  ;;  %v298_v21 = vmax.f32 %v214_v13, 0.0 }
  0xfb   :  { %v314_v23 = vpack.c.bf16 %v297_v16, %v293_v15  ;;  %v300_v24 = vmax.f32 %v275_v17, 0.0 }
  0xfc   :  { %v316_v26 = vpack.c.bf16 %v299_v20, %v295_v18  ;;  %v315_v27 = vpack.c.bf16 %v298_v21, %v294_v19  ;;  %v217_v28 = vpop.f32.mrb[8].mxu0  ;;  %v338_v20 = vpop.permute.xlu1 %337 }
  0xfd   :  { %v317_v29 = vpack.c.bf16 %v300_v24, %v296_v22  ;;  %v218_v30 = vadd.f32 %v217_v28, %v138_v25  ;;  %v278_v31 = vpop.f32.mrb[8].mxu1  ;;  %v219_v32 = vpop.f32.mrb[9].mxu0 }
  0xfe   :  { %v279_v33 = vadd.f32 %v278_v31, %v138_v25  ;;  %v220_v34 = vadd.f32 %v219_v32, %v138_v25  ;;  %v280_v35 = vpop.f32.mrb[9].mxu1  ;;  %v221_v36 = vpop.f32.mrb[10].mxu0  ;;  %362 = vmatprep.subr.bf16.mxu0 %v315_v27 }
  0xff   :  { %v301_v37 = vmax.f32 %v218_v30, 0.0  ;;  %v281_v38 = vadd.f32 %v280_v35, %v138_v25  ;;  %v282_v39 = vpop.f32.mrb[10].mxu1  ;;  %413 = vmatprep.subr.bf16.mxu1 %v317_v29  ;;  %v222_v40 = vpop.f32.mrb[11].mxu0  ;;  %363 = vmatpush1.bf16.msra.mxu0 %v314_v23 }
 0x100   :  { %v303_v41 = vmax.f32 %v279_v33, 0.0  ;;  %v302_v42 = vmax.f32 %v220_v34, 0.0  ;;  %v283_v43 = vpop.f32.mrb[11].mxu1  ;;  %414 = vmatpush1.bf16.msra.mxu1 %v316_v26 }
 0x101   :  { %v318_v44 = vpack.c.bf16 %v301_v37, %v301_v37  ;;  %v304_v45 = vmax.f32 %v281_v38, 0.0 }
 0x102   :  { %v320_v48 = vpack.c.bf16 %v303_v41, %v303_v41  ;;  %v319_v49 = vpack.c.bf16 %v302_v42, %v302_v42  ;;  %v474_v41 = vld [vmem:[%s1916_s5] sm:$0xff]  ;;  %v475_v42 = vld [vmem:[%s1916_s5 + $0x8] sm:$0x3] }
 0x103   :  { %v321_v50 = vpack.c.bf16 %v304_v45, %v304_v45  ;;  %v349_v51 = vsel %vm347_vm2, %v318_v44, 0 }
 0x104   :  { %1335 = vmatprep.subr.msk.bf16.mxu0 %vm347_vm2, %v319_v49  ;;  %v355_v52 = vsel %vm347_vm2, %v320_v48, 0  ;;  %v476_v48 = vpack.c.bf16 %v475_v42, %v474_v41  ;;  %v490_v49 = vpop.permute.xlu0 %489 }
 0x105   :  { %1338 = vmatprep.subr.msk.bf16.mxu1 %vm347_vm2, %v321_v50  ;;  %365 = vmatpush1.bf16.msra.mxu0 %v349_v51  ;;  %v495_v50 = vpop.permute.xlu1 %494 }
 0x106   :  { %416 = vmatpush1.bf16.msra.mxu1 %v355_v52 }
 0x108   :  { %1336 = vmatmul.mubr.msk.bf16.vlgmr.msra.gmra.mrb[12].mxu0 %vm340_vm3, %v308_v53 }
 0x109   :  { %1339 = vmatmul.mubr.msk.bf16.vlgmr.msra.gmra.mrb[12].mxu1 %vm340_vm3, %v308_v53  ;;  %402 = vmatprep.mubr.bf16.mxu0 %v1473_v7 }
 0x10a   :  { %453 = vmatprep.mubr.bf16.mxu1 %v1473_v7 }
 0x110   :  { %1337 = vmatmul.mubr.msk.bf16.gmra.mrb[16].mxu0 %vm340_vm3, %v309_v55 }
 0x111   :  { %1340 = vmatmul.mubr.msk.bf16.gmra.mrb[16].mxu1 %vm340_vm3, %v309_v55  ;;  %546 = vmatprep.mubr.bf16.mxu0 %v1473_v7 }
 0x112   :  { %589 = vmatprep.mubr.bf16.mxu1 %v1473_v7 }
 0x1db   :  { %v394_v58 = vpop.f32.mrb[12].mxu0 }
 0x1dc   :  { %v395_v59 = vadd.f32 %v394_v58, %v328_v56  ;;  %v445_v60 = vpop.f32.mrb[12].mxu1  ;;  %v396_v61 = vpop.f32.mrb[13].mxu0 }
 0x1dd   :  { %v446_v62 = vadd.f32 %v445_v60, %v328_v56  ;;  %v397_v63 = vadd.f32 %v396_v61, %v328_v56  ;;  %v447_v0 = vpop.f32.mrb[13].mxu1  ;;  %v398_v1 = vpop.f32.mrb[14].mxu0 }
 0x1de   :  { %v448_v2 = vadd.f32 %v447_v0, %v328_v56  ;;  %v399_v3 = vadd.f32 %v398_v1, %v333_v57  ;;  %v449_v4 = vpop.f32.mrb[14].mxu1  ;;  %v400_v5 = vpop.f32.mrb[15].mxu0  ;;  %v462_v10 = vmax.f32 %v395_v59, 0.0 }
 0x1df   :  { %v450_v6 = vadd.f32 %v449_v4, %v333_v57  ;;  %v401_v8 = vadd.f32 %v400_v5, %v333_v57  ;;  %v451_v9 = vpop.f32.mrb[15].mxu1  ;;  %v464_v13 = vmax.f32 %v446_v62, 0.0  ;;  %v463_v14 = vmax.f32 %v397_v63, 0.0  ;;  %v600_v4 = vld [vmem:[%s1918_s7] sm:$0xff]  ;;  %v601_v5 = vld [vmem:[%s1918_s7 + $0x8] sm:$0xff] }
 0x1e0   :  { %v466_v11 = vmax.f32 %v399_v3, 0.0  ;;  %v452_v12 = vadd.f32 %v451_v9, %v333_v57  ;;  %v465_v17 = vmax.f32 %v448_v2, 0.0 }
 0x1e1   :  { %v468_v15 = vmax.f32 %v450_v6, 0.0  ;;  %v467_v16 = vmax.f32 %v401_v8, 0.0 }
 0x1e2   :  { %v477_v18 = vpack.c.bf16 %v466_v11, %v462_v10  ;;  %v469_v19 = vmax.f32 %v452_v12, 0.0  ;;  %v603_v12 = vpack.c.bf16 %v601_v5, %v600_v4 }
 0x1e3   :  { %v479_v21 = vpack.c.bf16 %v468_v15, %v464_v13  ;;  %v478_v22 = vpack.c.bf16 %v467_v16, %v463_v14  ;;  %v404_v23 = vpop.f32.mrb[16].mxu0  ;;  %v602_v13 = vld [vmem:[%s1918_s7 + $0x10] sm:$0x3]  ;;  %v615_v15 = vpop.permute.xlu0 %614 }
 0x1e4   :  { %v480_v24 = vpack.c.bf16 %v469_v19, %v465_v17  ;;  %v405_v25 = vadd.f32 %v404_v23, %v338_v20  ;;  %v455_v26 = vpop.f32.mrb[16].mxu1  ;;  %v406_v27 = vpop.f32.mrb[17].mxu0  ;;  %v604_v14 = vpack.c.bf16 %v602_v13, %v602_v13 }
 0x1e5   :  { %v456_v28 = vadd.f32 %v455_v26, %v338_v20  ;;  %v407_v29 = vadd.f32 %v406_v27, %v338_v20  ;;  %v457_v30 = vpop.f32.mrb[17].mxu1  ;;  %v408_v31 = vpop.f32.mrb[18].mxu0  ;;  %514 = vmatprep.subr.bf16.mxu0 %v478_v22 }
 0x1e6   :  { %v470_v32 = vmax.f32 %v405_v25, 0.0  ;;  %v458_v33 = vadd.f32 %v457_v30, %v338_v20  ;;  %v459_v34 = vpop.f32.mrb[18].mxu1  ;;  %557 = vmatprep.subr.bf16.mxu1 %v480_v24  ;;  %v409_v35 = vpop.f32.mrb[19].mxu0  ;;  %515 = vmatpush1.bf16.msra.mxu0 %v477_v18 }
 0x1e7   :  { %v472_v36 = vmax.f32 %v456_v28, 0.0  ;;  %v471_v37 = vmax.f32 %v407_v29, 0.0  ;;  %v460_v38 = vpop.f32.mrb[19].mxu1  ;;  %558 = vmatpush1.bf16.msra.mxu1 %v479_v21  ;;  %v620_v16 = vpop.permute.xlu1 %619 }
 0x1e8   :  { %v481_v39 = vpack.c.bf16 %v470_v32, %v470_v32  ;;  %v473_v40 = vmax.f32 %v458_v33, 0.0  ;;  %v625_v42 = vpop.permute.xlu0 %624 }
 0x1e9   :  { %v483_v43 = vpack.c.bf16 %v472_v36, %v472_v36  ;;  %v482_v44 = vpack.c.bf16 %v471_v37, %v471_v37 }
 0x1ea   :  { %v484_v45 = vpack.c.bf16 %v473_v40, %v473_v40  ;;  %v503_v46 = vsel %vm501_vm4, %v481_v39, 0 }
 0x1eb   :  { %1341 = vmatprep.subr.msk.bf16.mxu0 %vm501_vm4, %v482_v44  ;;  %v509_v47 = vsel %vm501_vm4, %v483_v43, 0  ;;  %v785_v13 = vpop.permute.xlu1 %784 }
 0x1ec   :  { %1343 = vmatprep.subr.msk.bf16.mxu1 %vm501_vm4, %v484_v45  ;;  %517 = vmatpush1.bf16.msra.mxu0 %v503_v46 }
 0x1ed   :  { %560 = vmatpush1.bf16.msra.mxu1 %v509_v47 }
 0x1ef   :  { %1342 = vmatmul.mubr.msk.bf16.vlgmr.msra.gmra.mrb[20].mxu0 %vm497_vm5, %v476_v48 }
 0x1f0   :  { %1344 = vmatmul.mubr.msk.bf16.vlgmr.msra.gmra.mrb[20].mxu1 %vm497_vm5, %v476_v48  ;;  %679 = vmatprep.mubr.bf16.mxu0 %v1473_v7 }
 0x1f1   :  { %730 = vmatprep.mubr.bf16.mxu1 %v1473_v7 }
 0x2c2   :  { %v548_v51 = vpop.f32.mrb[20].mxu0 }
 0x2c3   :  { %v591_v52 = vpop.f32.mrb[20].mxu1  ;;  %v550_v53 = vpop.f32.mrb[21].mxu0  ;;  %v549_v56 = vadd.f32 %v548_v51, %v490_v49 }
 0x2c4   :  { %v593_v54 = vpop.f32.mrb[21].mxu1  ;;  %v552_v55 = vpop.f32.mrb[22].mxu0  ;;  %v592_v60 = vadd.f32 %v591_v52, %v490_v49  ;;  %v551_v61 = vadd.f32 %v550_v53, %v490_v49 }
 0x2c5   :  { %v553_v57 = vadd.f32 %v552_v55, %v495_v50  ;;  %v595_v58 = vpop.f32.mrb[22].mxu1  ;;  %v554_v59 = vpop.f32.mrb[23].mxu0  ;;  %v594_v1 = vadd.f32 %v593_v54, %v490_v49 }
 0x2c6   :  { %v596_v62 = vadd.f32 %v595_v58, %v495_v50  ;;  %v555_v63 = vadd.f32 %v554_v59, %v495_v50  ;;  %v597_v0 = vpop.f32.mrb[23].mxu1 }
 0x2c7   :  { %v605_v2 = vpack.c.bf16 %v553_v57, %v549_v56  ;;  %v598_v3 = vadd.f32 %v597_v0, %v495_v50  ;;  %v762_v0 = vld [vmem:[%s1920_s9 + $0x8] sm:$0xff] }
 0x2c8   :  { %v607_v6 = vpack.c.bf16 %v596_v62, %v592_v60  ;;  %v606_v8 = vpack.c.bf16 %v555_v63, %v551_v61  ;;  %v761_v63 = vld [vmem:[%s1920_s9] sm:$0xff] }
 0x2c9   :  { %v608_v9 = vpack.c.bf16 %v598_v3, %v594_v1  ;;  %v636_v10 = vsel %vm634_vm6, %v605_v2, 0 }
 0x2ca   :  { %1345 = vmatprep.subr.msk.bf16.mxu0 %vm634_vm6, %v606_v8  ;;  %v642_v11 = vsel %vm634_vm6, %v607_v6, 0  ;;  %v766_v6 = vpack.c.bf16 %v762_v0, %v761_v63  ;;  %v763_v8 = vld [vmem:[%s1920_s9 + $0x10] sm:$0xff] }
 0x2cb   :  { %1348 = vmatprep.subr.msk.bf16.mxu1 %vm634_vm6, %v608_v9  ;;  %648 = vmatpush1.bf16.msra.mxu0 %v636_v10  ;;  %v764_v9 = vld [vmem:[%s1920_s9 + $0x18] sm:$0xff] }
 0x2cc   :  { %699 = vmatpush1.bf16.msra.mxu1 %v642_v11  ;;  %v767_v10 = vpack.c.bf16 %v764_v9, %v763_v8  ;;  %v765_v11 = vld [vmem:[%s1920_s9 + $0x20] sm:$0xf] }
 0x2ce   :  { %1346 = vmatmul.mubr.msk.bf16.vlgmr.msra.gmra.mrb[24].mxu0 %vm627_vm7, %v603_v12 }
 0x2cf   :  { %1349 = vmatmul.mubr.msk.bf16.vlgmr.msra.gmra.mrb[24].mxu1 %vm627_vm7, %v603_v12  ;;  %689 = vmatprep.mubr.bf16.mxu0 %v1473_v7  ;;  %v768_v12 = vpack.c.bf16 %v765_v11, %v765_v11 }
 0x2d0   :  { %740 = vmatprep.mubr.bf16.mxu1 %v1473_v7 }
 0x2d6   :  { %1347 = vmatmul.mubr.msk.bf16.gmra.mrb[28].mxu0 %vm627_vm7, %v604_v14 }
 0x2d7   :  { %1350 = vmatmul.mubr.msk.bf16.gmra.mrb[28].mxu1 %vm627_vm7, %v604_v14  ;;  %860 = vmatprep.mubr.bf16.mxu0 %v1473_v7  ;;  %v790_v14 = vpop.permute.xlu0 %789 }
 0x2d8   :  { %921 = vmatprep.mubr.bf16.mxu1 %v1473_v7 }
 0x3a1   :  { %v681_v17 = vpop.f32.mrb[24].mxu0 }
 0x3a2   :  { %v682_v18 = vadd.f32 %v681_v17, %v615_v15  ;;  %v732_v19 = vpop.f32.mrb[24].mxu1  ;;  %v683_v20 = vpop.f32.mrb[25].mxu0 }
 0x3a3   :  { %v733_v21 = vadd.f32 %v732_v19, %v615_v15  ;;  %v684_v22 = vadd.f32 %v683_v20, %v615_v15  ;;  %v734_v23 = vpop.f32.mrb[25].mxu1  ;;  %v685_v24 = vpop.f32.mrb[26].mxu0 }
 0x3a4   :  { %v735_v25 = vadd.f32 %v734_v23, %v615_v15  ;;  %v686_v26 = vadd.f32 %v685_v24, %v620_v16  ;;  %v736_v27 = vpop.f32.mrb[26].mxu1  ;;  %v687_v28 = vpop.f32.mrb[27].mxu0  ;;  %v749_v32 = vmax.f32 %v682_v18, 0.0 }
 0x3a5   :  { %v737_v29 = vadd.f32 %v736_v27, %v620_v16  ;;  %v688_v30 = vadd.f32 %v687_v28, %v620_v16  ;;  %v738_v31 = vpop.f32.mrb[27].mxu1  ;;  %v751_v35 = vmax.f32 %v733_v21, 0.0  ;;  %v750_v36 = vmax.f32 %v684_v22, 0.0 }
 0x3a6   :  { %v753_v33 = vmax.f32 %v686_v26, 0.0  ;;  %v739_v34 = vadd.f32 %v738_v31, %v620_v16  ;;  %v752_v39 = vmax.f32 %v735_v25, 0.0 }
 0x3a7   :  { %v755_v37 = vmax.f32 %v737_v29, 0.0  ;;  %v754_v38 = vmax.f32 %v688_v30, 0.0 }
 0x3a8   :  { %v769_v40 = vpack.c.bf16 %v753_v33, %v749_v32  ;;  %v756_v41 = vmax.f32 %v739_v34, 0.0 }
 0x3a9   :  { %v771_v43 = vpack.c.bf16 %v755_v37, %v751_v35  ;;  %v770_v44 = vpack.c.bf16 %v754_v38, %v750_v36  ;;  %v691_v45 = vpop.f32.mrb[28].mxu0  ;;  %v795_v37 = vpop.permute.xlu1 %794 }
 0x3aa   :  { %v772_v46 = vpack.c.bf16 %v756_v41, %v752_v39  ;;  %v692_v47 = vadd.f32 %v691_v45, %v625_v42  ;;  %v742_v48 = vpop.f32.mrb[28].mxu1  ;;  %v693_v49 = vpop.f32.mrb[29].mxu0 }
 0x3ab   :  { %v743_v50 = vadd.f32 %v742_v48, %v625_v42  ;;  %v694_v51 = vadd.f32 %v693_v49, %v625_v42  ;;  %v744_v52 = vpop.f32.mrb[29].mxu1  ;;  %v695_v53 = vpop.f32.mrb[30].mxu0  ;;  %828 = vmatprep.subr.bf16.mxu0 %v770_v44 }
 0x3ac   :  { %v757_v54 = vmax.f32 %v692_v47, 0.0  ;;  %v745_v55 = vadd.f32 %v744_v52, %v625_v42  ;;  %v746_v56 = vpop.f32.mrb[30].mxu1  ;;  %889 = vmatprep.subr.bf16.mxu1 %v772_v46  ;;  %v696_v57 = vpop.f32.mrb[31].mxu0  ;;  %829 = vmatpush1.bf16.msra.mxu0 %v769_v40 }
 0x3ad   :  { %v759_v58 = vmax.f32 %v743_v50, 0.0  ;;  %v758_v59 = vmax.f32 %v694_v51, 0.0  ;;  %v747_v60 = vpop.f32.mrb[31].mxu1  ;;  %890 = vmatpush1.bf16.msra.mxu1 %v771_v43  ;;  %v800_v41 = vpop.permute.xlu0 %799 }
 0x3ae   :  { %v773_v61 = vpack.c.bf16 %v757_v54, %v757_v54  ;;  %v760_v62 = vmax.f32 %v745_v55, 0.0 }
 0x3af   :  { %v775_v1 = vpack.c.bf16 %v759_v58, %v759_v58  ;;  %v774_v2 = vpack.c.bf16 %v758_v59, %v758_v59 }
 0x3b0   :  { %v776_v3 = vpack.c.bf16 %v760_v62, %v760_v62  ;;  %v817_v4 = vsel %vm501_vm4, %v773_v61, 0 }
 0x3b1   :  { %1351 = vmatprep.subr.msk.bf16.mxu0 %vm501_vm4, %v774_v2  ;;  %v823_v5 = vsel %vm501_vm4, %v775_v1, 0 }
 0x3b2   :  { %1355 = vmatprep.subr.msk.bf16.mxu1 %vm501_vm4, %v776_v3  ;;  %831 = vmatpush1.bf16.msra.mxu0 %v817_v4 }
 0x3b3   :  { %892 = vmatpush1.bf16.msra.mxu1 %v823_v5 }
 0x3b5   :  { %1352 = vmatmul.mubr.msk.bf16.vlgmr.msra.gmra.mrb[32].mxu0 %vm497_vm5, %v766_v6 }
 0x3b6   :  { %1356 = vmatmul.mubr.msk.bf16.vlgmr.msra.gmra.mrb[32].mxu1 %vm497_vm5, %v766_v6  ;;  %870 = vmatprep.mubr.bf16.mxu0 %v1473_v7  ;;  %v805_v6 = vpop.permute.xlu1 %804 }
 0x3b7   :  { %931 = vmatprep.mubr.bf16.mxu1 %v1473_v7 }
 0x3bd   :  { %1353 = vmatmul.mubr.msk.bf16.gmra.mrb[36].mxu0 %vm497_vm5, %v767_v10 }
 0x3be   :  { %1357 = vmatmul.mubr.msk.bf16.gmra.mrb[36].mxu1 %vm497_vm5, %v767_v10  ;;  %880 = vmatprep.mubr.bf16.mxu0 %v1473_v7 }
 0x3bf   :  { %941 = vmatprep.mubr.bf16.mxu1 %v1473_v7 }
 0x3c5   :  { %1354 = vmatmul.mubr.msk.bf16.gmra.mrb[40].mxu0 %vm497_vm5, %v768_v12 }
 0x3c6   :  { %1358 = vmatmul.mubr.msk.bf16.gmra.mrb[40].mxu1 %vm497_vm5, %v768_v12  ;;  %1109 = vmatprep.mubr.bf16.mxu0 %v1473_v7 }
 0x3c7   :  { %1190 = vmatprep.mubr.bf16.mxu1 %v1473_v7 }
 0x488   :  { %v862_v15 = vpop.f32.mrb[32].mxu0 }
 0x489   :  { %v863_v16 = vadd.f32 %v862_v15, %v785_v13  ;;  %v923_v17 = vpop.f32.mrb[32].mxu1  ;;  %v864_v18 = vpop.f32.mrb[33].mxu0 }
 0x48a   :  { %v924_v19 = vadd.f32 %v923_v17, %v785_v13  ;;  %v865_v20 = vadd.f32 %v864_v18, %v785_v13  ;;  %v925_v21 = vpop.f32.mrb[33].mxu1  ;;  %v866_v22 = vpop.f32.mrb[34].mxu0 }
 0x48b   :  { %v926_v23 = vadd.f32 %v925_v21, %v785_v13  ;;  %v867_v24 = vadd.f32 %v866_v22, %v790_v14  ;;  %v927_v25 = vpop.f32.mrb[34].mxu1  ;;  %v868_v26 = vpop.f32.mrb[35].mxu0  ;;  %v950_v30 = vmax.f32 %v863_v16, 0.0 }
 0x48c   :  { %v928_v27 = vadd.f32 %v927_v25, %v790_v14  ;;  %v869_v28 = vadd.f32 %v868_v26, %v790_v14  ;;  %v929_v29 = vpop.f32.mrb[35].mxu1  ;;  %v952_v33 = vmax.f32 %v924_v19, 0.0  ;;  %v951_v34 = vmax.f32 %v865_v20, 0.0 }
 0x48d   :  { %v954_v31 = vmax.f32 %v867_v24, 0.0  ;;  %v930_v32 = vadd.f32 %v929_v29, %v790_v14  ;;  %v953_v38 = vmax.f32 %v926_v23, 0.0  ;;  %v971_v29 = vld [vmem:[%s1922_s11 + $0x8] sm:$0xff] }
 0x48e   :  { %v956_v35 = vmax.f32 %v928_v27, 0.0  ;;  %v955_v36 = vmax.f32 %v869_v28, 0.0  ;;  %v970_v28 = vld [vmem:[%s1922_s11] sm:$0xff] }
 0x48f   :  { %v984_v39 = vpack.c.bf16 %v954_v31, %v950_v30  ;;  %v957_v40 = vmax.f32 %v930_v32, 0.0 }
 0x490   :  { %v986_v42 = vpack.c.bf16 %v956_v35, %v952_v33  ;;  %v985_v43 = vpack.c.bf16 %v955_v36, %v951_v34  ;;  %v872_v44 = vpop.f32.mrb[36].mxu0  ;;  %v979_v35 = vpack.c.bf16 %v971_v29, %v970_v28  ;;  %v972_v36 = vld [vmem:[%s1922_s11 + $0x10] sm:$0xff] }
 0x491   :  { %v987_v45 = vpack.c.bf16 %v957_v40, %v953_v38  ;;  %v873_v46 = vadd.f32 %v872_v44, %v795_v37  ;;  %v933_v47 = vpop.f32.mrb[36].mxu1  ;;  %v874_v48 = vpop.f32.mrb[37].mxu0  ;;  %v975_v40 = vld [vmem:[%s1922_s11 + $0x28] sm:$0xff] }
 0x492   :  { %v934_v49 = vadd.f32 %v933_v47, %v795_v37  ;;  %v875_v50 = vadd.f32 %v874_v48, %v795_v37  ;;  %v935_v51 = vpop.f32.mrb[37].mxu1  ;;  %v876_v52 = vpop.f32.mrb[38].mxu0  ;;  %1077 = vmatprep.subr.bf16.mxu0 %v985_v43  ;;  %v977_v43 = vld [vmem:[%s1922_s11 + $0x38] sm:$0xff] }
 0x493   :  { %v936_v53 = vadd.f32 %v935_v51, %v795_v37  ;;  %v877_v54 = vadd.f32 %v876_v52, %v800_v41  ;;  %v937_v55 = vpop.f32.mrb[38].mxu1  ;;  %1158 = vmatprep.subr.bf16.mxu1 %v987_v45  ;;  %v878_v56 = vpop.f32.mrb[39].mxu0  ;;  %1078 = vmatpush1.bf16.msra.mxu0 %v984_v39  ;;  %v958_v60 = vmax.f32 %v873_v46, 0.0  ;;  %v973_v37 = vld [vmem:[%s1922_s11 + $0x18] sm:$0xff]  ;;  %v974_v39 = vld [vmem:[%s1922_s11 + $0x20] sm:$0xff] }
 0x494   :  { %v938_v57 = vadd.f32 %v937_v55, %v800_v41  ;;  %v879_v58 = vadd.f32 %v878_v56, %v800_v41  ;;  %v939_v59 = vpop.f32.mrb[39].mxu1  ;;  %1159 = vmatpush1.bf16.msra.mxu1 %v986_v42  ;;  %v960_v63 = vmax.f32 %v934_v49, 0.0  ;;  %v959_v0 = vmax.f32 %v875_v50, 0.0  ;;  %v976_v42 = vld [vmem:[%s1922_s11 + $0x30] sm:$0xff]  ;;  %v978_v45 = vld [vmem:[%s1922_s11 + $0x40] sm:$0xff]  ;;  %v1008_v47 = vpop.permute.xlu0 %1007  ;;  %s1474_s11 = smov [#allocation2]  }
 0x495   :  { %v962_v61 = vmax.f32 %v877_v54, 0.0  ;;  %v940_v62 = vadd.f32 %v939_v59, %v800_v41  ;;  %v961_v3 = vmax.f32 %v936_v53, 0.0  ;;  %v980_v38 = vpack.c.bf16 %v973_v37, %v972_v36  ;;  %v1013_v48 = vpop.permute.xlu1 %1012  ;;  %s1316_s21 = sshll.u32 %s1474_s11, 4  ;;  %s1317_s21 = int_to_ptr.vmem [resolvable:$true] %s1316_s21 }
 0x496   :  { %v964_v1 = vmax.f32 %v938_v57, 0.0  ;;  %v963_v2 = vmax.f32 %v879_v58, 0.0  ;;  %v981_v41 = vpack.c.bf16 %v975_v40, %v974_v39  ;;  %v982_v44 = vpack.c.bf16 %v977_v43, %v976_v42  ;;  %s1449_s7 = scalar_lea.vmem %s1317_s21, 4608  ;;  %p1454_p1 = scmp.lt.s32.totalorder %s1317_s21, %s1317_s21 }
 0x497   :  { %v988_v4 = vpack.c.bf16 %v962_v61, %v958_v60  ;;  %v965_v5 = vmax.f32 %v940_v62, 0.0  ;;  %v983_v46 = vpack.c.bf16 %v978_v45, %v978_v45  ;;  %p1450_p0 = scmp.ne.s32.totalorder %s1317_s21, %s1449_s7  ;;  %p1455_p2 = scmp.lt.s32.totalorder %s1449_s7, %s1449_s7 }
 0x498   :  { %v990_v8 = vpack.c.bf16 %v964_v1, %v960_v63  ;;  %v989_v9 = vpack.c.bf16 %v963_v2, %v959_v0  ;;  %v882_v10 = vpop.f32.mrb[40].mxu0  ;;  %v1018_v0 = vpop.permute.xlu0 %1017 }
 0x499   :  { %v991_v11 = vpack.c.bf16 %v965_v5, %v961_v3  ;;  %v883_v12 = vadd.f32 %v882_v10, %v805_v6  ;;  %v943_v13 = vpop.f32.mrb[40].mxu1  ;;  %v884_v14 = vpop.f32.mrb[41].mxu0  ;;  %p1456_p3 = por %p1455_p2, %p1454_p1 }
 0x49a   :  { %v944_v15 = vadd.f32 %v943_v13, %v805_v6  ;;  %v885_v16 = vadd.f32 %v884_v14, %v805_v6  ;;  %v945_v17 = vpop.f32.mrb[41].mxu1  ;;  %v886_v18 = vpop.f32.mrb[42].mxu0  ;;  %1079 = vmatprep.subr.bf16.mxu0 %v989_v9 }
 0x49b   :  { %v966_v19 = vmax.f32 %v883_v12, 0.0  ;;  %v946_v20 = vadd.f32 %v945_v17, %v805_v6  ;;  %v947_v21 = vpop.f32.mrb[42].mxu1  ;;  %1160 = vmatprep.subr.bf16.mxu1 %v991_v11  ;;  %v887_v22 = vpop.f32.mrb[43].mxu0  ;;  %1080 = vmatpush1.bf16.msra.mxu0 %v988_v4  ;;  %p1457_p4 = pnand %p1456_p3, %p1450_p0 }
 0x49c   :  { %v968_v23 = vmax.f32 %v944_v15, 0.0  ;;  %v967_v24 = vmax.f32 %v885_v16, 0.0  ;;  %v948_v25 = vpop.f32.mrb[43].mxu1  ;;  %1161 = vmatpush1.bf16.msra.mxu1 %v990_v8  ;;  %v1023_v1 = vpop.permute.xlu1 %1022 }
 0x49d   :  { %v992_v26 = vpack.c.bf16 %v966_v19, %v966_v19  ;;  %v969_v27 = vmax.f32 %v946_v20, 0.0  ;;  %v1028_v22 = vpop.permute.xlu0 %1027 }
 0x49e   :  { %v994_v30 = vpack.c.bf16 %v968_v23, %v968_v23  ;;  %v993_v31 = vpack.c.bf16 %v967_v24, %v967_v24 }
 0x49f   :  { %v995_v32 = vpack.c.bf16 %v969_v27, %v969_v27  ;;  %v1066_v33 = vsel %vm347_vm2, %v992_v26, 0 }
 0x4a0   :  { %1359 = vmatprep.subr.msk.bf16.mxu0 %vm347_vm2, %v993_v31  ;;  %v1072_v34 = vsel %vm347_vm2, %v994_v30, 0  ;;  %v1033_v24 = vpop.permute.xlu1 %1032 }
 0x4a1   :  { %1365 = vmatprep.subr.msk.bf16.mxu1 %vm347_vm2, %v995_v32  ;;  %1082 = vmatpush1.bf16.msra.mxu0 %v1066_v33 }
 0x4a2   :  { %1163 = vmatpush1.bf16.msra.mxu1 %v1072_v34 }
 0x4a4   :  { %1360 = vmatmul.mubr.msk.bf16.vlgmr.msra.gmra.mrb[44].mxu0 %vm340_vm3, %v979_v35 }
 0x4a5   :  { %1366 = vmatmul.mubr.msk.bf16.vlgmr.msra.gmra.mrb[44].mxu1 %vm340_vm3, %v979_v35  ;;  %1119 = vmatprep.mubr.bf16.mxu0 %v1473_v7 }
 0x4a6   :  { %1200 = vmatprep.mubr.bf16.mxu1 %v1473_v7 }
 0x4ac   :  { %1361 = vmatmul.mubr.msk.bf16.gmra.mrb[48].mxu0 %vm340_vm3, %v980_v38 }
 0x4ad   :  { %1367 = vmatmul.mubr.msk.bf16.gmra.mrb[48].mxu1 %vm340_vm3, %v980_v38  ;;  %1129 = vmatprep.mubr.bf16.mxu0 %v1473_v7 }
 0x4ae   :  { %1210 = vmatprep.mubr.bf16.mxu1 %v1473_v7 }
 0x4b4   :  { %1362 = vmatmul.mubr.msk.bf16.gmra.mrb[52].mxu0 %vm340_vm3, %v981_v41 }
 0x4b5   :  { %1368 = vmatmul.mubr.msk.bf16.gmra.mrb[52].mxu1 %vm340_vm3, %v981_v41  ;;  %1139 = vmatprep.mubr.bf16.mxu0 %v1473_v7 }
 0x4b6   :  { %1220 = vmatprep.mubr.bf16.mxu1 %v1473_v7 }
 0x4bc   :  { %1363 = vmatmul.mubr.msk.bf16.gmra.mrb[56].mxu0 %vm340_vm3, %v982_v44 }
 0x4bd   :  { %1369 = vmatmul.mubr.msk.bf16.gmra.mrb[56].mxu1 %vm340_vm3, %v982_v44  ;;  %1149 = vmatprep.mubr.bf16.mxu0 %v1473_v7 }
 0x4be   :  { %1230 = vmatprep.mubr.bf16.mxu1 %v1473_v7 }
 0x4c4   :  { %1364 = vmatmul.mubr.msk.bf16.gmra.mrb[60].mxu0 %vm340_vm3, %v983_v46 }
 0x4c5   :  { %1370 = vmatmul.mubr.msk.bf16.gmra.mrb[60].mxu1 %vm340_vm3, %v983_v46 }
 0x577   :  { %v1111_v49 = vpop.f32.mrb[44].mxu0 }
 0x578   :  { %v1112_v50 = vadd.f32 %v1111_v49, %v1008_v47  ;;  %v1192_v51 = vpop.f32.mrb[44].mxu1  ;;  %v1113_v52 = vpop.f32.mrb[45].mxu0 }
 0x579   :  { %v1193_v53 = vadd.f32 %v1192_v51, %v1008_v47  ;;  %v1114_v54 = vadd.f32 %v1113_v52, %v1008_v47  ;;  %v1194_v55 = vpop.f32.mrb[45].mxu1  ;;  %v1115_v56 = vpop.f32.mrb[46].mxu0 }
 0x57a   :  { %1377 = vtanh.f32 %v1112_v50  ;;  %v1195_v57 = vadd.f32 %v1194_v55, %v1008_v47  ;;  %v1116_v58 = vadd.f32 %v1115_v56, %v1013_v48  ;;  %v1196_v59 = vpop.f32.mrb[46].mxu1  ;;  %v1117_v7 = vpop.f32.mrb[47].mxu0 }
 0x57b   :  { %1379 = vtanh.f32 %v1193_v53  ;;  %v1197_v60 = vadd.f32 %v1196_v59, %v1013_v48  ;;  %v1198_v61 = vpop.f32.mrb[47].mxu1  ;;  %v1118_v62 = vadd.f32 %v1117_v7, %v1013_v48  ;;  %v1043_v50 = vpop.permute.xlu1 %1042 }
 0x57c   :  { %1381 = vtanh.f32 %v1114_v54  ;;  %v1199_v63 = vadd.f32 %v1198_v61, %v1013_v48  ;;  %v1038_v48 = vpop.permute.xlu0 %1037 }
 0x57d   :  { %1383 = vtanh.f32 %v1195_v57 }
 0x57e   :  { %1385 = vtanh.f32 %v1116_v58 }
 0x57f   :  { %1387 = vtanh.f32 %v1197_v60  ;;  %v1121_v2 = vpop.f32.mrb[48].mxu0 }
 0x580   :  { %1389 = vtanh.f32 %v1118_v62  ;;  %v1122_v3 = vadd.f32 %v1121_v2, %v1018_v0  ;;  %v1202_v4 = vpop.f32.mrb[48].mxu1  ;;  %v1123_v5 = vpop.f32.mrb[49].mxu0 }
 0x581   :  { %1391 = vtanh.f32 %v1199_v63  ;;  %v1203_v6 = vadd.f32 %v1202_v4, %v1018_v0  ;;  %v1124_v8 = vadd.f32 %v1123_v5, %v1018_v0  ;;  %v1204_v9 = vpop.f32.mrb[49].mxu1  ;;  %v1125_v10 = vpop.f32.mrb[50].mxu0 }
 0x582   :  { %1393 = vtanh.f32 %v1122_v3  ;;  %v1205_v11 = vadd.f32 %v1204_v9, %v1018_v0  ;;  %v1126_v12 = vadd.f32 %v1125_v10, %v1023_v1  ;;  %v1206_v13 = vpop.f32.mrb[50].mxu1  ;;  %v1127_v14 = vpop.f32.mrb[51].mxu0 }
 0x583   :  { %1395 = vtanh.f32 %v1203_v6  ;;  %v1207_v15 = vadd.f32 %v1206_v13, %v1023_v1  ;;  %v1208_v16 = vpop.f32.mrb[51].mxu1  ;;  %v1128_v18 = vadd.f32 %v1127_v14, %v1023_v1 }
 0x584   :  { %v1378_v17 = vpop.eup %1377  ;;  %1397 = vtanh.f32 %v1124_v8  ;;  %v1209_v20 = vadd.f32 %v1208_v16, %v1023_v1 }
 0x585   :  { %v1380_v19 = vpop.eup %1379  ;;  %1275 = vst [vmem:[#allocation2] sm:$0xff] %v1378_v17  ;;  %1399 = vtanh.f32 %v1205_v11  ;;  %v1048_v11 = vpop.permute.xlu0 %1047 }
 0x586   :  { %v1382_v21 = vpop.eup %1381  ;;  %1277 = vst [vmem:[#allocation2 + $0x10] sm:$0xff] %v1380_v19  ;;  %1401 = vtanh.f32 %v1126_v12 }
 0x587   :  { %v1384_v23 = vpop.eup %1383  ;;  %1276 = vst [vmem:[#allocation2 + $0x8] sm:$0xff] %v1382_v21  ;;  %1403 = vtanh.f32 %v1207_v15  ;;  %v1131_v25 = vpop.f32.mrb[52].mxu0 }
 0x588   :  { %v1386_v26 = vpop.eup %1385  ;;  %1278 = vst [vmem:[#allocation2 + $0x18] sm:$0xff] %v1384_v23  ;;  %1405 = vtanh.f32 %v1128_v18  ;;  %v1132_v27 = vadd.f32 %v1131_v25, %v1028_v22  ;;  %v1212_v28 = vpop.f32.mrb[52].mxu1 }
 0x589   :  { %v1133_v29 = vpop.f32.mrb[53].mxu0  ;;  %v1388_v30 = vpop.eup %1387  ;;  %1279 = vst [vmem:[#allocation2 + $0x20] sm:$0xff] %v1386_v26  ;;  %1407 = vtanh.f32 %v1209_v20  ;;  %v1213_v31 = vadd.f32 %v1212_v28, %v1028_v22 }
 0x58a   :  { %v1134_v32 = vadd.f32 %v1133_v29, %v1028_v22  ;;  %v1214_v33 = vpop.f32.mrb[53].mxu1  ;;  %v1135_v34 = vpop.f32.mrb[54].mxu0  ;;  %1281 = vst [vmem:[#allocation2 + $0x30] sm:$0xff] %v1388_v30  ;;  %1409 = vtanh.f32 %v1132_v27 }
 0x58b   :  { %v1390_v35 = vpop.eup %1389  ;;  %v1215_v36 = vadd.f32 %v1214_v33, %v1028_v22  ;;  %v1136_v37 = vadd.f32 %v1135_v34, %v1033_v24  ;;  %v1216_v38 = vpop.f32.mrb[54].mxu1  ;;  %1411 = vtanh.f32 %v1213_v31 }
 0x58c   :  { %v1137_v39 = vpop.f32.mrb[55].mxu0  ;;  %v1392_v40 = vpop.eup %1391  ;;  %1280 = vst [vmem:[#allocation2 + $0x28] sm:$0xff] %v1390_v35  ;;  %v1217_v41 = vadd.f32 %v1216_v38, %v1033_v24  ;;  %1413 = vtanh.f32 %v1134_v32 }
 0x58d   :  { %v1218_v42 = vpop.f32.mrb[55].mxu1  ;;  %v1394_v43 = vpop.eup %1393  ;;  %1282 = vst [vmem:[#allocation2 + $0x38] sm:$0xff] %v1392_v40  ;;  %v1138_v44 = vadd.f32 %v1137_v39, %v1033_v24  ;;  %1415 = vtanh.f32 %v1215_v36 }
 0x58e   :  { %v1396_v45 = vpop.eup %1395  ;;  %1283 = vst [vmem:[#allocation2 + $0x40] sm:$0xff] %v1394_v43  ;;  %v1219_v46 = vadd.f32 %v1218_v42, %v1033_v24  ;;  %1417 = vtanh.f32 %v1136_v37 }
 0x58f   :  { %v1398_v47 = vpop.eup %1397  ;;  %1285 = vst [vmem:[#allocation2 + $0x50] sm:$0xff] %v1396_v45  ;;  %1419 = vtanh.f32 %v1217_v41  ;;  %v1141_v51 = vpop.f32.mrb[56].mxu0 }
 0x590   :  { %v1400_v49 = vpop.eup %1399  ;;  %1284 = vst [vmem:[#allocation2 + $0x48] sm:$0xff] %v1398_v47  ;;  %1421 = vtanh.f32 %v1138_v44  ;;  %v1142_v53 = vadd.f32 %v1141_v51, %v1038_v48  ;;  %v1222_v54 = vpop.f32.mrb[56].mxu1 }
 0x591   :  { %v1402_v52 = vpop.eup %1401  ;;  %1286 = vst [vmem:[#allocation2 + $0x58] sm:$0xff] %v1400_v49  ;;  %v1143_v55 = vpop.f32.mrb[57].mxu0  ;;  %1423 = vtanh.f32 %v1219_v46  ;;  %v1223_v57 = vadd.f32 %v1222_v54, %v1038_v48 }
 0x592   :  { %v1404_v56 = vpop.eup %1403  ;;  %1287 = vst [vmem:[#allocation2 + $0x60] sm:$0xff] %v1402_v52  ;;  %v1144_v58 = vadd.f32 %v1143_v55, %v1038_v48  ;;  %v1224_v59 = vpop.f32.mrb[57].mxu1  ;;  %1425 = vtanh.f32 %v1142_v53 }
 0x593   :  { %v1145_v7 = vpop.f32.mrb[58].mxu0  ;;  %v1406_v60 = vpop.eup %1405  ;;  %1289 = vst [vmem:[#allocation2 + $0x70] sm:$0xff] %v1404_v56  ;;  %v1225_v61 = vadd.f32 %v1224_v59, %v1038_v48  ;;  %1427 = vtanh.f32 %v1223_v57 }
 0x594   :  { %v1146_v62 = vadd.f32 %v1145_v7, %v1043_v50  ;;  %v1226_v63 = vpop.f32.mrb[58].mxu1  ;;  %v1147_v0 = vpop.f32.mrb[59].mxu0  ;;  %1288 = vst [vmem:[#allocation2 + $0x68] sm:$0xff] %v1406_v60  ;;  %1429 = vtanh.f32 %v1144_v58 }
 0x595   :  { %v1408_v1 = vpop.eup %1407  ;;  %v1227_v2 = vadd.f32 %v1226_v63, %v1043_v50  ;;  %v1228_v3 = vpop.f32.mrb[59].mxu1  ;;  %v1148_v5 = vadd.f32 %v1147_v0, %v1043_v50  ;;  %1431 = vtanh.f32 %v1225_v61 }
 0x596   :  { %v1410_v4 = vpop.eup %1409  ;;  %1290 = vst [vmem:[#allocation2 + $0x78] sm:$0xff] %v1408_v1  ;;  %v1229_v8 = vadd.f32 %v1228_v3, %v1043_v50  ;;  %1433 = vtanh.f32 %v1146_v62 }
 0x597   :  { %v1412_v6 = vpop.eup %1411  ;;  %1291 = vst [vmem:[#allocation2 + $0x80] sm:$0xff] %v1410_v4  ;;  %1435 = vtanh.f32 %v1227_v2  ;;  %v1151_v12 = vpop.f32.mrb[60].mxu0 }
 0x598   :  { %v1414_v9 = vpop.eup %1413  ;;  %1293 = vst [vmem:[#allocation2 + $0x90] sm:$0xff] %v1412_v6  ;;  %1437 = vtanh.f32 %v1148_v5  ;;  %v1152_v14 = vadd.f32 %v1151_v12, %v1048_v11  ;;  %v1232_v15 = vpop.f32.mrb[60].mxu1 }
 0x599   :  { %v1416_v10 = vpop.eup %1415  ;;  %1292 = vst [vmem:[#allocation2 + $0x88] sm:$0xff] %v1414_v9  ;;  %v1153_v16 = vpop.f32.mrb[61].mxu0  ;;  %1439 = vtanh.f32 %v1229_v8  ;;  %v1233_v18 = vadd.f32 %v1232_v15, %v1048_v11 }
 0x59a   :  { %v1418_v13 = vpop.eup %1417  ;;  %1294 = vst [vmem:[#allocation2 + $0x98] sm:$0xff] %v1416_v10  ;;  %v1154_v19 = vadd.f32 %v1153_v16, %v1048_v11  ;;  %v1234_v20 = vpop.f32.mrb[61].mxu1  ;;  %1441 = vtanh.f32 %v1152_v14 }
 0x59b   :  { %v1420_v17 = vpop.eup %1419  ;;  %1295 = vst [vmem:[#allocation2 + $0xa0] sm:$0xff] %v1418_v13  ;;  %v1155_v21 = vpop.f32.mrb[62].mxu0  ;;  %v1235_v23 = vadd.f32 %v1234_v20, %v1048_v11  ;;  %1443 = vtanh.f32 %v1233_v18 }
 0x59c   :  { %v1422_v22 = vpop.eup %1421  ;;  %1297 = vst [vmem:[#allocation2 + $0xb0] sm:$0xff] %v1420_v17  ;;  %v1236_v24 = vpop.f32.mrb[62].mxu1  ;;  %1445 = vtanh.f32 %v1154_v19 }
 0x59d   :  { %v1156_v25 = vpop.f32.mrb[63].mxu0  ;;  %v1424_v26 = vpop.eup %1423  ;;  %1296 = vst [vmem:[#allocation2 + $0xa8] sm:$0xff] %v1422_v22  ;;  %1447 = vtanh.f32 %v1235_v23 }
 0x59e   :  { %v1237_v27 = vpop.f32.mrb[63].mxu1  ;;  %v1426_v28 = vpop.eup %1425  ;;  %1298 = vst [vmem:[#allocation2 + $0xb8] sm:$0xff] %v1424_v26 }
 0x59f   :  { %v1428_v29 = vpop.eup %1427  ;;  %1299 = vst [vmem:[#allocation2 + $0xc0] sm:$0xff] %v1426_v28 }
 0x5a0   :  { %v1430_v30 = vpop.eup %1429  ;;  %1301 = vst [vmem:[#allocation2 + $0xd0] sm:$0xff] %v1428_v29 }
 0x5a1   :  { %v1432_v31 = vpop.eup %1431  ;;  %1300 = vst [vmem:[#allocation2 + $0xc8] sm:$0xff] %v1430_v30 }
 0x5a2   :  { %v1434_v32 = vpop.eup %1433  ;;  %1302 = vst [vmem:[#allocation2 + $0xd8] sm:$0xff] %v1432_v31 }
 0x5a3   :  { %v1436_v33 = vpop.eup %1435  ;;  %1303 = vst [vmem:[#allocation2 + $0xe0] sm:$0xff] %v1434_v32 }
 0x5a4   :  { %v1438_v34 = vpop.eup %1437  ;;  %1305 = vst [vmem:[#allocation2 + $0xf0] sm:$0xff] %v1436_v33 }
 0x5a5   :  { %v1440_v35 = vpop.eup %1439  ;;  %1304 = vst [vmem:[#allocation2 + $0xe8] sm:$0xff] %v1438_v34 }
 0x5a6   :  { %v1442_v36 = vpop.eup %1441  ;;  %1306 = vst [vmem:[#allocation2 + $0xf8] sm:$0xff] %v1440_v35 }
 0x5a7   :  { %v1444_v37 = vpop.eup %1443  ;;  %1307 = vst [vmem:[#allocation2 + $0x100] sm:$0xff] %v1442_v36 }
 0x5a8   :  { %v1446_v38 = vpop.eup %1445  ;;  %1309 = vst [vmem:[#allocation2 + $0x110] sm:$0xff] %v1444_v37 }
 0x5a9   :  { %v1448_v39 = vpop.eup %1447  ;;  %1308 = vst [vmem:[#allocation2 + $0x108] sm:$0xff] %v1446_v38 }
 0x5aa   :  { %1310 = vst [vmem:[#allocation2 + $0x118] sm:$0xff] %v1448_v39 }
 0x5ab   :  { %1460 = shalt.err (!%p1457_p4)
}
 0x5ac   :  { %s1461_s22 = scalar_lea.hbm %s1924_s13, 4608 }
 0x5ad   :  { %p1462_p5 = scmp.ne.s32.totalorder %s1924_s13, %s1461_s22  ;;  %p1465_p6 = scmp.lt.u32.totalorder %s1461_s22, %s1924_s13 }
 0x5af   :  { %p1467_p7 = pnand %p1465_p6, %p1462_p5 }
 0x5b1   :  { %1470 = shalt.err (!%p1467_p7)
}
 0x5b2   :  { %s1475_s26 = smov 512   ;;  %s1476_s27 = smov 32  }
 0x5b3   :  { %1322 = dma.vmem_to_hbm [thread:$0]  %s1317_s21, 4608, %s1924_s13, [#allocation3], %s1475_s26, %s1475_s26, %s1476_s27  }
 0x5b4   :  { %1471 = dma.done.wait [#allocation3], 4608  }
 0x5b5   :  { %1472 = vsyncadd [#allocation3], 4294962688 }
 0x5b6   :  { %1326 = vsyncpa [#allocation3], 1 }

</bundles_post_ra>
